<compile_context>
chip_gen: v6e
topology: v6e:2x2x1
jax: 0.10.0
libtpu: 0.0.40
codegen_flags: <defaults>
</compile_context>

<pallas_src>
import jax
import jax.numpy as jnp
from jax.experimental import pallas as pl
from jax.experimental.pallas import tpu as pltpu


def _biasfree_ln_nchw_kernel(x_ref, w_ref, o_ref):
    """One (1, C, TS) tile — C on sublanes, spatial on lanes (lane-dense).

    The PyTorch path (to_3d -> LayerNorm over last dim -> to_4d) is exactly a
    per-pixel reduction over the channel axis of NCHW, so the transposes are
    fused away.  NOTE: mean is intentionally NOT subtracted from the output —
    this matches BiasFree_LayerNorm (x / sqrt(var + eps) * weight); do not "fix".
    """
    x = x_ref[...].astype(jnp.float32)                  # (1, C, TS) in f32
    inv_c = jnp.float32(1.0 / x.shape[1])

    # Two-pass variance over channels (sublane reduction -> XLU slot); the extra
    # subtract+square is free since the kernel is HBM-bound.
    mu = jnp.sum(x, axis=1, keepdims=True) * inv_c
    xc = x - mu
    var = jnp.sum(xc * xc, axis=1, keepdims=True) * inv_c
    inv = jax.lax.rsqrt(var + jnp.float32(1e-5))        # EUP — effectively free

    w = w_ref[...][None, :, :]                          # (1, C, 1), already f32
    o_ref[...] = (x * inv * w).astype(o_ref.dtype)


def biasfree_layernorm_nchw(x, weight, *, target_block_bytes=1024 * 1024):
    """BiasFree LayerNorm over the channel axis of an NCHW tensor.

    Equivalent to SGF_arch LayerNorm(dim, 'BiasFree'):
        to_4d(BiasFree_LayerNorm(to_3d(x)), h, w)
    i.e. for every (b, h, w):  x / sqrt(var_over_C(x) + 1e-5) * weight
    """
    B, C, H, W = x.shape
    HW = H * W
    itemsize = jnp.dtype(x.dtype).itemsize

    x3 = x.reshape(B, C, HW)                            # contiguous -> free reshape
    w2 = weight.astype(jnp.float32).reshape(C, 1)       # pre-cast once, stays resident

    cdiv = lambda a, b: -(-a // b)
    rup128 = lambda v: ((v + 127) // 128) * 128

    # --- balanced, lane-dense spatial tile (multiple of 128 lanes) ---
    hw128 = rup128(HW)
    ts_max = max(128, (target_block_bytes // (C * itemsize)) // 128 * 128)
    num_s = cdiv(hw128, ts_max)
    # Ensure enough grid steps for the pipeline / v7x's second TensorCore,
    # without dropping below a 128-lane tile.
    min_steps = 8
    if B * num_s < min_steps and (hw128 // 128) > num_s:
        num_s = min(cdiv(min_steps, B), hw128 // 128)
    ts = rup128(cdiv(hw128, num_s))
    num_s = cdiv(HW, ts)          # actual grid extent; last block ragged (writes masked)

    grid = (B, num_s)

    # Tight VMEM budget: 2x-buffered in/out blocks (I/O dtype) + a few f32
    # temporaries for the cast/centered copies + weight + ~50% headroom.
    block_io = C * ts * itemsize
    block_f32 = C * ts * 4
    vmem_limit = int(min(max(int((4 * block_io + 3 * block_f32) * 1.5) + (1 << 16),
                             4 * 1024 * 1024),
                         64 * 1024 * 1024))

    out = pl.pallas_call(
        _biasfree_ln_nchw_kernel,
        out_shape=jax.ShapeDtypeStruct((B, C, HW), x.dtype),
        grid_spec=pltpu.PrefetchScalarGridSpec(
            num_scalar_prefetch=0,
            grid=grid,
            in_specs=[
                pl.BlockSpec((1, C, ts), lambda b, s: (b, 0, s)),
                pl.BlockSpec((C, 1), lambda b, s: (0, 0)),   # weight stays resident
            ],
            out_specs=pl.BlockSpec((1, C, ts), lambda b, s: (b, 0, s)),
        ),
        compiler_params=pltpu.CompilerParams(
            dimension_semantics=("parallel", "parallel"),    # megacore-shardable
            vmem_limit_bytes=vmem_limit,
        ),
    )(x3, w2)

    return out.reshape(B, C, H, W)


def _reference_nchw(x, weight):
    x32 = x.astype(jnp.float32)
    var = jnp.var(x32, axis=1, keepdims=True)  # biased (ddof=0) == unbiased=False
    y = x32 / jnp.sqrt(var + 1e-5) * weight.astype(jnp.float32).reshape(1, -1, 1, 1)
    return y.astype(x.dtype)


if __name__ == "__main__":
    key = jax.random.PRNGKey(0)
    B, C = 2, 16  # width=16 in SegmentationGuidedEnhanceNet -> LayerNorm dim=16
    # Module initializes weight to ones; use a non-trivial deterministic weight
    # so the per-channel scale path is exercised.
    weight = jnp.linspace(0.5, 1.5, C, dtype=jnp.float32)

    k1, k2, k3 = jax.random.split(key, 3)

    # Case 1: power-of-two spatial size, f32 I/O.
    x1 = jax.random.normal(k1, (B, C, 16, 16), dtype=jnp.float32)
    out1 = jax.block_until_ready(biasfree_layernorm_nchw(x1, weight))
    ref1 = _reference_nchw(x1, weight)
    assert out1.shape == x1.shape and out1.dtype == x1.dtype
    assert jnp.allclose(out1, ref1, atol=1e-5, rtol=1e-5)

    # Case 2: awkward spatial size — exercises the ragged edge-block path
    # (no wrapper pad / crop; last block's OOB columns are masked on store).
    x2 = jax.random.normal(k2, (B, C, 15, 13), dtype=jnp.float32) * 3.0 + 5.0
    out2 = jax.block_until_ready(biasfree_layernorm_nchw(x2, weight))
    ref2 = _reference_nchw(x2, weight)
    assert out2.shape == x2.shape and out2.dtype == x2.dtype
    assert jnp.allclose(out2, ref2, atol=1e-5, rtol=1e-5)

    # Case 3: bf16 I/O (halves the dominant HBM streams); internal math stays f32.
    x3 = jax.random.normal(k3, (B, C, 16, 16), dtype=jnp.bfloat16)
    out3 = jax.block_until_ready(biasfree_layernorm_nchw(x3, weight))
    ref3 = _reference_nchw(x3, weight)
    assert out3.shape == x3.shape and out3.dtype == jnp.bfloat16
    assert jnp.allclose(out3.astype(jnp.float32), ref3.astype(jnp.float32),
                        atol=3e-2, rtol=3e-2)

    print("KERNEL_OK")
</pallas_src>

<mosaic_0001>
module attributes {stable_mosaic.version = 11 : i64} {
  func.func @_biasfree_ln_nchw_kernel(%arg0: i32, %arg1: i32, %arg2: memref<1x16x128xf32, #tpu.memory_space<vmem>>, %arg3: memref<16x1xf32, #tpu.memory_space<vmem>>, %arg4: memref<1x16x128xf32, #tpu.memory_space<vmem>>) attributes {dimension_semantics = [#tpu.dimension_semantics<parallel>, #tpu.dimension_semantics<parallel>], iteration_bounds = array<i64: 2, 2>, scalar_prefetch = 0 : i64, scratch_operands = 0 : i64, tpu.core_type = #tpu.core_type<tc>, window_params = [{transform_indices = @transform_0, window_bounds = array<i64: 1, 16, 128>}, {pipeline_mode = #tpu.pipeline_mode<synchronous>, transform_indices = @transform_1, window_bounds = array<i64: 16, 1>}, {transform_indices = @transform_2, window_bounds = array<i64: 1, 16, 128>}]} {
    %c0 = arith.constant 0 : index
    %c0_0 = arith.constant 0 : index
    %c0_1 = arith.constant 0 : index
    %0 = vector.load %arg2[%c0, %c0_0, %c0_1] : memref<1x16x128xf32, #tpu.memory_space<vmem>>, vector<1x16x128xf32>
    %cst = arith.constant dense<0.000000e+00> : vector<1x128xf32>
    %1 = vector.multi_reduction <add>, %0, %cst [1] : vector<1x16x128xf32> to vector<1x128xf32>
    %2 = vector.shape_cast %1 : vector<1x128xf32> to vector<1x1x128xf32>
    %cst_2 = arith.constant 6.250000e-02 : f32
    %3 = vector.broadcast %cst_2 : f32 to vector<1x1x128xf32>
    %4 = arith.mulf %2, %3 : vector<1x1x128xf32>
    %5 = vector.broadcast %4 : vector<1x1x128xf32> to vector<1x16x128xf32>
    %6 = arith.subf %0, %5 : vector<1x16x128xf32>
    %7 = arith.mulf %6, %6 : vector<1x16x128xf32>
    %cst_3 = arith.constant dense<0.000000e+00> : vector<1x128xf32>
    %8 = vector.multi_reduction <add>, %7, %cst_3 [1] : vector<1x16x128xf32> to vector<1x128xf32>
    %9 = vector.shape_cast %8 : vector<1x128xf32> to vector<1x1x128xf32>
    %cst_4 = arith.constant 6.250000e-02 : f32
    %10 = vector.broadcast %cst_4 : f32 to vector<1x1x128xf32>
    %11 = arith.mulf %9, %10 : vector<1x1x128xf32>
    %cst_5 = arith.constant 9.99999974E-6 : f32
    %12 = vector.broadcast %cst_5 : f32 to vector<1x1x128xf32>
    %13 = arith.addf %11, %12 : vector<1x1x128xf32>
    %14 = math.rsqrt %13 : vector<1x1x128xf32>
    %c0_6 = arith.constant 0 : index
    %c0_7 = arith.constant 0 : index
    %15 = vector.load %arg3[%c0_6, %c0_7] : memref<16x1xf32, #tpu.memory_space<vmem>>, vector<16x1xf32>
    %16 = vector.shape_cast %15 : vector<16x1xf32> to vector<1x16x1xf32>
    %17 = vector.broadcast %14 : vector<1x1x128xf32> to vector<1x16x128xf32>
    %18 = arith.mulf %0, %17 : vector<1x16x128xf32>
    %19 = vector.broadcast %16 : vector<1x16x1xf32> to vector<1x16x128xf32>
    %20 = arith.mulf %18, %19 : vector<1x16x128xf32>
    %c0_8 = arith.constant 0 : index
    %c0_9 = arith.constant 0 : index
    %c0_10 = arith.constant 0 : index
    %21 = vector.load %arg4[%c0_8, %c0_9, %c0_10] : memref<1x16x128xf32, #tpu.memory_space<vmem>>, vector<1x16x128xf32>
    tpu.vector_store %arg4[%c0_8, %c0_9, %c0_10], %20 {strides = array<i32>} : memref<1x16x128xf32, #tpu.memory_space<vmem>>, vector<1x16x128xf32>,
    return
  }
  func.func @transform_0(%arg0: i32, %arg1: i32) -> (i32, i32, i32) {
    %c0_i32 = arith.constant 0 : i32
    %c0_i32_0 = arith.constant 0 : i32
    return %arg0, %c0_i32, %arg1 : i32, i32, i32
  }
  func.func @transform_1(%arg0: i32, %arg1: i32) -> (i32, i32) {
    %c0_i32 = arith.constant 0 : i32
    %c0_i32_0 = arith.constant 0 : i32
    %c0_i32_1 = arith.constant 0 : i32
    return %c0_i32, %c0_i32_0 : i32, i32
  }
  func.func @transform_2(%arg0: i32, %arg1: i32) -> (i32, i32, i32) {
    %c0_i32 = arith.constant 0 : i32
    %c0_i32_0 = arith.constant 0 : i32
    return %arg0, %c0_i32, %arg1 : i32, i32, i32
  }
}

</mosaic_0001>

<bundles_post_ra>
// kernel: tpu_custom_call.1
= control target key start
LH: loop header
LB: loop body
LE: loop exit
PB: predicated region body
PF: predicated region fallthrough
CT: control target
= control target key end

     0   :  { %7 = vsyncpa [#allocation3], 0  ;;  %s753_s0 = inlined_call_operand.hbm [shape: f32[2,16,256], index: 0, kind: input, shape index: {}]   ;;  %s754_s1 = inlined_call_operand.vmem [shape: f32[16,1], index: 1, kind: input, shape index: {}]   ;;  %s755_s2 = inlined_call_operand.hbm [shape: f32[2,16,256], index: 2, kind: output, shape index: {}]  }
   0x1   :  { %9 = vsyncpa [#allocation3 + $0x1], 0 }
   0x2   :  { %10 = vsyncpa [#allocation4], 0 }
   0x3   :  { %12 = vsyncpa [#allocation4 + $0x1], 0  ;;  %s577_s9 = smov 0   ;;  %s579_s10 = smov 0  }
   0x4   :  { %s581_s11 = smov 0   ;;  %s583_s12 = smov 0  }
   0x5   :  { %s585_s13 = smov 0   ;;  %s587_s14 = smov 0  }
   0x6   :  { %s589_s15 = smov 0   ;;  %s591_s16 = smov 0  }
   0x7 LB: > { %s324_s17 = sadd.s32 4294967295, %s551_s16   ;;  %s325_s18 = sadd.s32 4294967294, %s551_s16   ;;  %s551_s16 = sphi %s591_s16, %s18_s16   ;;  %s547_s15 = sphi %s589_s15, %s770_s15   ;;  %s543_s14 = sphi %s587_s14, %s769_s14   ;;  %s539_s13 = sphi %s585_s13, %s768_s13   ;;  %s535_s12 = sphi %s583_s12, %s767_s12   ;;  %s531_s11 = sphi %s581_s11, %s766_s11   ;;  %s527_s10 = sphi %s579_s10, %s765_s10   ;;  %s523_s9 = sphi %s577_s9, %s764_s9  }
   0x8   : > { %s27_s19 = sadd.s32 1, %s543_s14  ;;  %s30_s20 = sadd.s32 1, %s547_s15 }
   0x9   : > { %p28_p0 = scmp.ge.s32.totalorder %s27_s19, 2  ;;  %s39_s21 = sadd.s32 1, %s531_s11 }
   0xa   : > { %p46_p1 = scmp.ne.s32.totalorder %s531_s11, %s527_s10  ;;  %p47_p2 = scmp.eq.s32.totalorder %s551_s16, 0 }
   0xb   : > { %s772_s19 = smov (%p28_p0, %s27_s19), 0  ;;  %s774_s20 = smov (!%p28_p0, %s30_s20), %s547_s15 }
   0xc   : > { %s35_s22 = ssub.s32 %s543_s14, %s772_s19  ;;  %p630_p3 = por %p47_p2, %p46_p1 }
   0xd   : > { %p32_p4 = scmp.ge.s32.totalorder %s774_s20, 2  ;;  %p52_p5 = scmp.ne.s32.totalorder %s527_s10, %s523_s9 }
   0xe   : > { %p53_p6 = scmp.eq.s32.totalorder %s324_s17, 0  ;;  %p99_p7 = scmp.eq.s32.totalorder %s324_s17, 3 }
   0xf   : > { %s776_s20 = smov (%p32_p4, %s774_s20), 0  ;;  %p105_p10 = scmp.eq.s32.totalorder %s325_s18, 3 }
  0x10   : > { %758 = sst [smem:[#allocation8_spill]] %s776_s20  ;;  %p638_p8 = por %p53_p6, %p52_p5 }
  0x11   : > { %p642_p9 = por %p99_p7, %p46_p1  ;;  %s34_s26 = ssub.s32 %s547_s15, %s776_s20 }
  0x12   : > { %s36_s27 = sor.u32 %s35_s22, %s34_s26  ;;  %p648_p12 = por %p105_p10, %p52_p5 }
  0x13   : > { %p37_p11 = scmp.eq.s32.totalorder %s36_s27, 0  ;;  %p351_p13 = scmp.lt.s32.totalorder %s551_s16, 4 }
  0x14   : > { %s128_s29 = sand.u32 1, %s531_s11   ;;  %s329_s4 = sshll.u32 %s547_s15, 2 }
  0x15   : > { %s655_s30 = scalar_select %p37_p11, %s531_s11, %s39_s21  }
  0x16   : > { %s328_s3 = sshll.u32 %s128_s29, 4  ;;  %s137_s5 = sadd.s32 %s543_s14, %s329_s4 }
  0x17   : > { %s132_s6 = scalar_lea.vmem [#allocation2], %s328_s3  ;;  %s330_s8 = sshll.u32 %s137_s5, 7 }
  0x18   : > { %s140_s7 = sshll.u32 %s132_s6, 4  ;;  %s139_s18 = scalar_lea.hbm %s753_s0, %s330_s8  ;;  %s141_s7 = int_to_ptr.vmem [resolvable:$true] %s140_s7 }
  0x19   : > { %p664_p0 = pnand %p351_p13, %p630_p3  ;;  %s129_s26 = scalar_lea.sflag [#allocation3], %s128_s29 }
  0x1a   : > { %s440_s21 = scalar_lea.vmem %s141_s7, 256  ;;  %s553_s27 = smov [#allocation2]  }
  0x1b   : > { %p429_p1 = pneg %p664_p0  ;;  %p441_p2 = scmp.ne.s32.totalorder %s141_s7, %s440_s21 }
  0x1c   : > { %s445_s3 = sshll.u32 %s553_s27, 4  ;;  %s446_s3 = int_to_ptr.vmem [resolvable:$false] %s445_s3 }
  0x1d   : > { %p443_p4 = pnand %p441_p2, %p429_p1  ;;  %s447_s4 = scalar_lea.vmem %s446_s3, 512 }
  0x1e   : > { %p448_p6 = scmp.lt.s32.totalorder %s141_s7, %s446_s3  ;;  %p449_p7 = scmp.lt.s32.totalorder %s447_s4, %s440_s21 }
  0x1f   : > { %p444_p5 = pneg %p443_p4 }
  0x20   : > { %p450_p10 = por %p449_p7, %p448_p6 }
  0x22   : > { %p451_p11 = pnand %p450_p10, %p444_p5 }
  0x24   : > { %454 = shalt.err (!%p451_p11)
}
  0x25   : > { %s554_s20 = smov 256   ;;  %s555_s23 = smov 128  }
  0x26   : > { %s556_s29 = smov 8   ;;  %p331_p3 = scmp.ge.s32.totalorder %s551_s16, 1 }
  0x27   : > { %346 = dma.hbm_to_vmem [thread:$0]  (!%p664_p0), %s139_s18, 256, %s141_s7, %s129_s26, %s554_s20, %s555_s23, %s556_s29  }
  0x28   : > { %p148_p13 = scmp.lt.s32.totalorder %s551_s16, 5 }
  0x2a   : > { %p149_p1 = pnand %p331_p3, %p148_p13 }
  0x2b   : > { %s675_s5 = sand.u32 (!%p149_p1), 1, %s527_s10  }
  0x2c   : > { %152 = sbr.rel (%p149_p1) target bundleno = 197 (0xc5), region = 28  ;;  %s332_s6 = sshll.u32 (!%p149_p1), %s675_s5, 4 }
  0x2d   : > { %s155_s8 = scalar_lea.sflag (!%p149_p1), [#allocation3], %s675_s5  ;;  %s158_s17 = scalar_lea.vmem (!%p149_p1), [#allocation2], %s332_s6 }
  0x31   : > { %514 = dma.done.wait (%p638_p8), %s155_s8, 256  }
  0x32   : > { %516 = vsyncadd (%p638_p8), %s155_s8, 4294967040  ;;  %v557_v0 = vmov 0   ;;  %v203_v1 = vld [vmem:[%s754_s1] sm:$0xff]  ;;  %v204_v2 = vld [vmem:[%s754_s1 + $0x8] sm:$0xff]  ;;  %s335_s24 = sshll.u32 %s539_s13, 2  ;;  %s178_s27 = scalar_lea.vmem [#allocation5], %s332_s6 }
  0x33   : > { %424 = vset.pattern.permute.xlu0 %v557_v0  ;;  %v179_v3 = vld [vmem:[%s158_s17] sm:$0xff]  ;;  %v180_v4 = vld [vmem:[%s158_s17 + $0x8] sm:$0xff]  ;;  %s233_s21 = sadd.s32 %s535_s12, %s335_s24  ;;  %s236_s3 = sshll.u32 %s178_s27, 4  ;;  %s695_s3 = int_to_ptr.vmem [resolvable:$true] %s236_s3 }
  0x34   : > { %209 = vperm.xlu0 %424, %v203_v1   ;;  %v181_v5 = vadd.f32 %v180_v4, %v179_v3  ;;  %s336_s4 = sshll.u32 %s233_s21, 7  ;;  %s222_s12 = scalar_lea.sflag [#allocation4], %s675_s5 }
  0x35   : > { %s700_s13 = scalar_lea.hbm %s755_s2, %s336_s4  ;;  %s455_s29 = scalar_lea.vmem %s695_s3, 256 }
  0x36   : > { %v182_v6 = vrot.slane %v181_v5, 4  ;;  %p456_p8 = scmp.ne.s32.totalorder %s695_s3, %s455_s29  ;;  %s558_s6 = smov [#allocation5]  }
  0x37   : > { %s459_s8 = sshll.u32 %s558_s6, 4  ;;  %s460_s8 = int_to_ptr.vmem [resolvable:$false] %s459_s8 }
  0x38   : > { %214 = vperm.xlu0 %424, %v204_v2   ;;  %v183_v7 = vadd.f32 %v182_v6, %v181_v5  ;;  %p457_p0 = pnand %p456_p8, %p642_p9  ;;  %s461_s17 = scalar_lea.vmem %s460_s8, 512 }
  0x39   : > { %p462_p4 = scmp.lt.s32.totalorder %s695_s3, %s460_s8  ;;  %p463_p5 = scmp.lt.s32.totalorder %s461_s17, %s455_s29 }
  0x3a   : > { %v184_v8 = vrot.slane %v183_v7, 2  ;;  %p458_p2 = pneg %p457_p0 }
  0x3b   : > { %p464_p6 = por %p463_p5, %p462_p4 }
  0x3c   : > { %v185_v9 = vadd.f32 %v184_v8, %v183_v7 }
  0x3d   : > { %p465_p7 = pnand %p464_p6, %p458_p2 }
  0x3e   : > { %v186_v10 = vrot.slane %v185_v9, 1 }
  0x40   : > { %v187_v11 = vadd.f32 %v186_v10, %v185_v9 }
  0x42   : > { %v188_v12 = vmul.f32 0.0625, %v187_v11 }
  0x44   : > { %v189_v13 = vsub.f32 %v179_v3, %v188_v12  ;;  %v190_v14 = vsub.f32 %v180_v4, %v188_v12 }
  0x46   : > { %v191_v15 = vmul.f32 %v189_v13, %v189_v13  ;;  %v192_v16 = vmul.f32 %v190_v14, %v190_v14 }
  0x48   : > { %v193_v17 = vadd.f32 %v192_v16, %v191_v15 }
  0x4a   : > { %v194_v18 = vrot.slane %v193_v17, 4 }
  0x4c   : > { %v195_v19 = vadd.f32 %v194_v18, %v193_v17 }
  0x4e   : > { %v196_v20 = vrot.slane %v195_v19, 2 }
  0x50   : > { %v197_v21 = vadd.f32 %v196_v20, %v195_v19 }
  0x52   : > { %v198_v22 = vrot.slane %v197_v21, 1 }
  0x54   : > { %v199_v23 = vadd.f32 %v198_v22, %v197_v21 }
  0x56   : > { %v200_v24 = vmul.f32 0.0625, %v199_v23 }
  0x58   : > { %v201_v25 = vadd.f32 1e-05, %v200_v24 }
  0x5a   : > { %425 = vrsqrt.f32 %v201_v25 }
  0x67   : > { %v426_v26 = vpop.eup %425 }
  0x68   : > { %v205_v27 = vmul.f32 %v426_v26, %v179_v3  ;;  %v206_v30 = vmul.f32 %v426_v26, %v180_v4 }
  0xaf   : > { %v210_v28 = vpop.permute.xlu0 %209 }
  0xb0   : > { %v217_v29 = vmul.f32 %v210_v28, %v205_v27 }
  0xb2   : > { %219 = vst [vmem:[%s178_s27] sm:$0xff] %v217_v29 }
  0xb3   : > { %v215_v31 = vpop.permute.xlu0 %214 }
  0xb4   : > { %v218_v32 = vmul.f32 %v215_v31, %v206_v30 }
  0xb6   : > { %220 = vst [vmem:[%s178_s27 + $0x8] sm:$0xff] %v218_v32 }
  0xb7   : > { %468 = shalt.err (!%p465_p7)
}
  0xb8   : > { %s469_s7 = scalar_lea.hbm %s700_s13, 256  ;;  %s473_s26 = scalar_lea.hbm %s755_s2, 1024 }
  0xb9   : > { %p470_p10 = scmp.ne.s32.totalorder %s700_s13, %s469_s7  ;;  %p474_p13 = scmp.lt.s32.totalorder %s700_s13, %s755_s2 }
  0xba   : > { %p475_p1 = scmp.lt.s32.totalorder %s473_s26, %s469_s7 }
  0xbb   : > { %p471_p11 = pnand %p470_p10, %p642_p9 }
  0xbc   : > { %p476_p8 = por %p475_p1, %p474_p13 }
  0xbd   : > { %p472_p3 = pneg %p471_p11 }
  0xbf   : > { %p477_p0 = pnand %p476_p8, %p472_p3 }
  0xc1   : > { %480 = shalt.err (!%p477_p0)
}
  0xc2   : > { %s559_s27 = smov 128   ;;  %s560_s4 = smov 256  }
  0xc3   : > { %s561_s20 = smov 8  }
  0xc4   : > { %341 = dma.vmem_to_hbm [thread:$0]  (%p642_p9), %s695_s3, 256, %s700_s13, %s222_s12, %s559_s27, %s560_s4, %s561_s20  }
  0xc5 PF: > { %p352_p2 = scmp.ge.s32.totalorder %s551_s16, 2  ;;  %s251_s23 = sand.u32 1, %s523_s9  }
  0xc6   : > { %s252_s29 = scalar_lea.sflag [#allocation4], %s251_s23 }
  0xc7   : > { %p348_p4 = pnand %p352_p2, %p648_p12 }
  0xc9   : > { %p349_p5 = pneg %p348_p4 }
  0xcb   : > { %518 = dma.done.wait (%p349_p5), %s252_s29, 256  }
  0xcc   : > { %520 = vsyncadd (%p349_p5), %s252_s29, 4294967040  ;;  %s18_s16 = sadd.s32 1, %s551_s16   ;;  %s763_s25 = sld [smem:[#allocation8_spill]] }
  0xcd   : > { %p15_p6 = scmp.ge.s32.totalorder %s18_s16, 6   ;;  %s764_s9 = smov %s527_s10 }
  0xce   : > { %s765_s10 = smov %s531_s11  ;;  %s766_s11 = smov %s655_s30 }
  0xcf   : > { %s767_s12 = smov %s543_s14  ;;  %s768_s13 = smov %s547_s15 }
  0xd0   : > { %s769_s14 = smov %s772_s19  ;;  %17 = sbr.rel (!%p15_p6) target bundleno = 7 (0x7), region = 73 }
  0xd2   : > { %s770_s15 = smov %s763_s25 }
  0xd5   :  { %257 = vsyncpa [#allocation3], 1 }
  0xd6   :  { %259 = vsyncpa [#allocation3 + $0x1], 1 }
  0xd7   :  { %260 = vsyncpa [#allocation4], 1 }
  0xd8   :  { %262 = vsyncpa [#allocation4 + $0x1], 1 }

</bundles_post_ra>
